<compile_context>
chip_gen: v7x
topology: tpu7x:2x2x1
jax: 0.10.0
libtpu: 0.0.40
codegen_flags: <defaults>
</compile_context>

<pallas_src>
import jax
import jax.numpy as jnp
from jax.experimental import pallas as pl
from jax.experimental.pallas import tpu as pltpu


def _linear_add_kernel(w_ref, b_ref, x_ref, other_ref, o_ref):
    # w_ref:     (N, K)  weight, PyTorch Linear layout (out_features, in_features)
    # b_ref:     (N, 1)  bias column
    # x_ref:     (K, TM) lane-dense input block (rows of x on the lane axis)
    # other_ref: (N, TM) lane-dense residual block
    # o_ref:     (N, TM) lane-dense output block
    w = w_ref[...]                          # (N, K) tiny tile
    x = x_ref[...]                          # (K, TM)
    acc = b_ref[...] + other_ref[...]       # (N, TM); bias broadcast once per block
    k_in = w.shape[1]
    for k in range(k_in):                   # K = 3 -> 3 unrolled VPU FMAs, no MXU
        acc = acc + w[:, k:k + 1] * x[k:k + 1, :]
    o_ref[...] = acc.astype(o_ref.dtype)


def linear_add(x, weight, bias, other, *, tm=512):
    """y = x @ weight.T + bias + other, linear applied over the last axis of x."""
    *lead, k = x.shape
    lead = tuple(lead)
    n = weight.shape[0]
    m = 1
    for d in lead:
        m *= d

    # Lane-dense operands: (K, M) and (N, M). XLA-side transposes are cheap plumbing.
    x_t = x.reshape(m, k).T
    if other.shape != lead + (n,):
        # TODO(synk): for a genuinely broadcast `other` a revisiting BlockSpec would
        # avoid materializing the broadcast; here `other` is already full-size.
        other = jnp.broadcast_to(other, lead + (n,))
    other_t = other.reshape(m, n).T
    w2 = weight.astype(jnp.float32)
    b_col = bias.reshape(n, 1).astype(jnp.float32)

    # Tile M (lane axis) in multiples of 128; pad the tail block if needed.
    tm = min(tm, ((m + 127) // 128) * 128)
    grid_m = (m + tm - 1) // tm
    m_pad = grid_m * tm
    if m_pad != m:
        x_t = jnp.pad(x_t, ((0, 0), (0, m_pad - m)))
        other_t = jnp.pad(other_t, ((0, 0), (0, m_pad - m)))

    out_t = pl.pallas_call(
        _linear_add_kernel,
        out_shape=jax.ShapeDtypeStruct((n, m_pad), x.dtype),
        grid=(grid_m,),
        in_specs=[
            pl.BlockSpec((n, k), lambda i: (0, 0)),    # weight: whole, resident
            pl.BlockSpec((n, 1), lambda i: (0, 0)),    # bias: whole, resident
            pl.BlockSpec((k, tm), lambda i: (0, i)),   # x block (lane-dense)
            pl.BlockSpec((n, tm), lambda i: (0, i)),   # other block (lane-dense)
        ],
        out_specs=pl.BlockSpec((n, tm), lambda i: (0, i)),
        compiler_params=pltpu.CompilerParams(
            dimension_semantics=("parallel",)),
    )(w2, b_col, x_t, other_t)

    return out_t[:, :m].T.reshape(lead + (n,))


if __name__ == "__main__":
    key = jax.random.PRNGKey(0)
    k_x, k_o, k_w, k_b = jax.random.split(key, 4)

    # NHWC interpretation of the module shapes: (1, 64, 64, 3) -> (1, 64, 64, 8)
    B, H, W = 1, 64, 64
    IN_F, OUT_F = 3, 8

    x = jax.random.normal(k_x, (B, H, W, IN_F), dtype=jnp.float32)
    other = jax.random.normal(k_o, (B, H, W, OUT_F), dtype=jnp.float32)

    # Deterministic nn.Linear(3, 8)-shaped parameters
    bound = 1.0 / (IN_F ** 0.5)
    weight = jax.random.uniform(k_w, (OUT_F, IN_F), jnp.float32, -bound, bound)
    bias = jax.random.uniform(k_b, (OUT_F,), jnp.float32, -bound, bound)

    out = jax.block_until_ready(linear_add(x, weight, bias, other))

    # Sanity check against plain JAX reference.
    ref = jnp.einsum("bhwk,nk->bhwn", x, weight) + bias + other
    assert out.shape == (B, H, W, OUT_F)
    assert jnp.allclose(out, ref, atol=1e-5, rtol=1e-5)

    print("KERNEL_OK")
</pallas_src>

<mosaic_0001>
module attributes {stable_mosaic.version = 11 : i64} {
  func.func @_linear_add_kernel(%arg0: i32, %arg1: memref<8x3xf32, #tpu.memory_space<vmem>>, %arg2: memref<8x1xf32, #tpu.memory_space<vmem>>, %arg3: memref<3x512xf32, #tpu.memory_space<vmem>>, %arg4: memref<8x512xf32, #tpu.memory_space<vmem>>, %arg5: memref<8x512xf32, #tpu.memory_space<vmem>>) attributes {dimension_semantics = [#tpu.dimension_semantics<parallel>], iteration_bounds = array<i64: 8>, scalar_prefetch = 0 : i64, scratch_operands = 0 : i64, tpu.core_type = #tpu.core_type<tc>, window_params = [{pipeline_mode = #tpu.pipeline_mode<synchronous>, transform_indices = @transform_0, window_bounds = array<i64: 8, 3>}, {pipeline_mode = #tpu.pipeline_mode<synchronous>, transform_indices = @transform_1, window_bounds = array<i64: 8, 1>}, {transform_indices = @transform_2, window_bounds = array<i64: 3, 512>}, {transform_indices = @transform_3, window_bounds = array<i64: 8, 512>}, {transform_indices = @transform_4, window_bounds = array<i64: 8, 512>}]} {
    %c0 = arith.constant 0 : index
    %c0_0 = arith.constant 0 : index
    %0 = vector.load %arg1[%c0, %c0_0] : memref<8x3xf32, #tpu.memory_space<vmem>>, vector<8x3xf32>
    %c0_1 = arith.constant 0 : index
    %c0_2 = arith.constant 0 : index
    %1 = vector.load %arg3[%c0_1, %c0_2] : memref<3x512xf32, #tpu.memory_space<vmem>>, vector<3x512xf32>
    %c0_3 = arith.constant 0 : index
    %c0_4 = arith.constant 0 : index
    %2 = vector.load %arg2[%c0_3, %c0_4] : memref<8x1xf32, #tpu.memory_space<vmem>>, vector<8x1xf32>
    %c0_5 = arith.constant 0 : index
    %c0_6 = arith.constant 0 : index
    %3 = vector.load %arg4[%c0_5, %c0_6] : memref<8x512xf32, #tpu.memory_space<vmem>>, vector<8x512xf32>
    %4 = vector.broadcast %2 : vector<8x1xf32> to vector<8x512xf32>
    %5 = arith.addf %4, %3 : vector<8x512xf32>
    %6 = vector.extract_strided_slice %0 {offsets = [0, 0], sizes = [8, 1], strides = [1, 1]} : vector<8x3xf32> to vector<8x1xf32>
    %7 = vector.extract_strided_slice %1 {offsets = [0, 0], sizes = [1, 512], strides = [1, 1]} : vector<3x512xf32> to vector<1x512xf32>
    %8 = vector.broadcast %6 : vector<8x1xf32> to vector<8x512xf32>
    %9 = vector.broadcast %7 : vector<1x512xf32> to vector<8x512xf32>
    %10 = arith.mulf %8, %9 : vector<8x512xf32>
    %11 = arith.addf %5, %10 : vector<8x512xf32>
    %12 = vector.extract_strided_slice %0 {offsets = [0, 1], sizes = [8, 1], strides = [1, 1]} : vector<8x3xf32> to vector<8x1xf32>
    %13 = vector.extract_strided_slice %1 {offsets = [1, 0], sizes = [1, 512], strides = [1, 1]} : vector<3x512xf32> to vector<1x512xf32>
    %14 = vector.broadcast %12 : vector<8x1xf32> to vector<8x512xf32>
    %15 = vector.broadcast %13 : vector<1x512xf32> to vector<8x512xf32>
    %16 = arith.mulf %14, %15 : vector<8x512xf32>
    %17 = arith.addf %11, %16 : vector<8x512xf32>
    %18 = vector.extract_strided_slice %0 {offsets = [0, 2], sizes = [8, 1], strides = [1, 1]} : vector<8x3xf32> to vector<8x1xf32>
    %19 = vector.extract_strided_slice %1 {offsets = [2, 0], sizes = [1, 512], strides = [1, 1]} : vector<3x512xf32> to vector<1x512xf32>
    %20 = vector.broadcast %18 : vector<8x1xf32> to vector<8x512xf32>
    %21 = vector.broadcast %19 : vector<1x512xf32> to vector<8x512xf32>
    %22 = arith.mulf %20, %21 : vector<8x512xf32>
    %23 = arith.addf %17, %22 : vector<8x512xf32>
    %c0_7 = arith.constant 0 : index
    %c0_8 = arith.constant 0 : index
    %24 = vector.load %arg5[%c0_7, %c0_8] : memref<8x512xf32, #tpu.memory_space<vmem>>, vector<8x512xf32>
    tpu.vector_store %arg5[%c0_7, %c0_8], %23 {strides = array<i32>} : memref<8x512xf32, #tpu.memory_space<vmem>>, vector<8x512xf32>,
    return
  }
  func.func @transform_0(%arg0: i32) -> (i32, i32) {
    %c0_i32 = arith.constant 0 : i32
    %c0_i32_0 = arith.constant 0 : i32
    %c0_i32_1 = arith.constant 0 : i32
    return %c0_i32, %c0_i32_0 : i32, i32
  }
  func.func @transform_1(%arg0: i32) -> (i32, i32) {
    %c0_i32 = arith.constant 0 : i32
    %c0_i32_0 = arith.constant 0 : i32
    %c0_i32_1 = arith.constant 0 : i32
    return %c0_i32, %c0_i32_0 : i32, i32
  }
  func.func @transform_2(%arg0: i32) -> (i32, i32) {
    %c0_i32 = arith.constant 0 : i32
    %c0_i32_0 = arith.constant 0 : i32
    return %c0_i32, %arg0 : i32, i32
  }
  func.func @transform_3(%arg0: i32) -> (i32, i32) {
    %c0_i32 = arith.constant 0 : i32
    %c0_i32_0 = arith.constant 0 : i32
    return %c0_i32, %arg0 : i32, i32
  }
  func.func @transform_4(%arg0: i32) -> (i32, i32) {
    %c0_i32 = arith.constant 0 : i32
    %c0_i32_0 = arith.constant 0 : i32
    return %c0_i32, %arg0 : i32, i32
  }
}

</mosaic_0001>

<bundles_post_ra>
// kernel: tpu_custom_call.1
= control target key start
LH: loop header
LB: loop body
LE: loop exit
PB: predicated region body
PF: predicated region fallthrough
CT: control target
= control target key end

     0   :  { %9 = vsyncpa [#allocation3], 0  ;;  %s991_s0 = inlined_call_operand.vmem [shape: f32[8,3], index: 0, kind: input, shape index: {}]   ;;  %s992_s1 = inlined_call_operand.vmem [shape: f32[8,1], index: 1, kind: input, shape index: {}]   ;;  %s993_s2 = inlined_call_operand.hbm [shape: f32[3,4096], index: 2, kind: input, shape index: {}]   ;;  %s994_s3 = inlined_call_operand.hbm [shape: f32[8,4096], index: 3, kind: input, shape index: {}]   ;;  %s995_s4 = inlined_call_operand.hbm [shape: f32[8,4096], index: 4, kind: output, shape index: {}]  }
   0x1   :  { %11 = vsyncpa [#allocation3 + $0x1], 0 }
   0x2   :  { %12 = vsyncpa [#allocation6], 0 }
   0x3   :  { %14 = vsyncpa [#allocation6 + $0x1], 0 }
   0x4   :  { %15 = vsyncpa [#allocation4], 0 }
   0x5   :  { %17 = vsyncpa [#allocation4 + $0x1], 0  ;;  %s773_s15 = smov 0   ;;  %s775_s16 = smov 0  }
   0x6   :  { %s777_s17 = smov 0   ;;  %s779_s18 = smov 0  }
   0x7 LB: > { %s794_s19 = sadd.s32 4294967295, %s740_s18   ;;  %s531_s20 = sadd.s32 4294967294, %s740_s18   ;;  %s740_s18 = sphi %s779_s18, %s1013_s18   ;;  %s736_s17 = sphi %s777_s17, %s1012_s17   ;;  %s732_s16 = sphi %s775_s16, %s1011_s16   ;;  %s728_s15 = sphi %s773_s15, %s1010_s15  }
   0x8   : > { %s798_s21 = sadd.s32 1, %s740_s18   ;;  %s72_s22 = sadd.s32 1, %s736_s17 }
   0x9   : > { %s69_s23 = ssub.s32 %s740_s18, %s798_s21  ;;  %p79_p0 = scmp.ne.s32.totalorder %s736_s17, %s732_s16 }
   0xa   : > { %p70_p1 = scmp.eq.s32.totalorder %s69_s23, 0  ;;  %p80_p2 = scmp.eq.s32.totalorder %s740_s18, 0 }
   0xb   : > { %p85_p3 = scmp.ne.s32.totalorder %s732_s16, %s728_s15  ;;  %p86_p4 = scmp.eq.s32.totalorder %s794_s19, 0 }
   0xc   : > { %s810_s24 = scalar_select %p70_p1, %s736_s17, %s72_s22  }
   0xd   : > { %p812_p5 = por %p80_p2, %p79_p0  ;;  %p816_p6 = por %p86_p4, %p85_p3 }
   0xe   : > { %p135_p7 = scmp.eq.s32.totalorder %s794_s19, 7  ;;  %p141_p8 = scmp.eq.s32.totalorder %s531_s20, 7 }
   0xf   : > { %s999_s26 = scalar_select %p816_p6, 1, 0 }
  0x10   : > { %p569_p9 = scmp.lt.s32.totalorder %s740_s18, 8  ;;  %p822_p10 = por %p135_p7, %p79_p0 }
  0x11   : > { %p826_p11 = por %p141_p8, %p85_p3  ;;  %s831_s29 = sand.u32 1, %s736_s17  }
  0x12   : > { %s1000_s27 = scalar_select %p822_p10, 1, 0 }
  0x13   : > { %s1001_s28 = scalar_select %p826_p11, 1, 0 }
  0x14   : > { %s549_s30 = sshll.u32 %s740_s18, 8  ;;  %s534_s5 = sshll.u32 %s831_s29, 4 }
  0x15   : > { %s838_s8 = scalar_lea.hbm %s993_s2, %s549_s30  ;;  %s171_s9 = scalar_lea.vmem [#allocation2], %s534_s5 }
  0x16   : > { %s179_s10 = sshll.u32 %s171_s9, 4  ;;  %p842_p12 = pnand %p569_p9, %p812_p5  ;;  %s846_s10 = int_to_ptr.vmem [resolvable:$true] %s179_s10 }
  0x17   : > { %s168_s12 = scalar_lea.sflag [#allocation3], %s831_s29  ;;  %s610_s13 = scalar_lea.hbm %s838_s8, 256 }
  0x18   : > { %p611_p1 = scmp.ne.s32.totalorder %s838_s8, %s610_s13  ;;  %p612_p2 = pneg %p842_p12 }
  0x19   : > { %s615_s22 = scalar_lea.hbm %s993_s2, 2048  ;;  %p616_p5 = scmp.lt.u32.totalorder %s838_s8, %s993_s2 }
  0x1a   : > { %p613_p3 = pnand %p612_p2, %p611_p1  ;;  %p617_p7 = scmp.lt.u32.totalorder %s615_s22, %s610_s13 }
  0x1b   : > { %p619_p9 = scmp.lt.u32.totalorder %s610_s13, %s838_s8 }
  0x1c   : > { %p614_p4 = pneg %p613_p3  ;;  %p618_p8 = por %p617_p7, %p616_p5 }
  0x1e   : > { %p620_p13 = por %p619_p9, %p618_p8 }
  0x20   : > { %p621_p0 = pnand %p620_p13, %p614_p4 }
  0x22   : > { %624 = shalt.err (!%p621_p0)
}
  0x23   : > { %s625_s30 = scalar_lea.vmem %s846_s10, 256  ;;  %s742_s5 = smov [#allocation2]  }
  0x24   : > { %p626_p1 = scmp.ne.s32.totalorder %s846_s10, %s625_s30  ;;  %s630_s6 = sshll.u32 %s742_s5, 4  ;;  %s631_s6 = int_to_ptr.vmem [resolvable:$false] %s630_s6 }
  0x25   : > { %s632_s7 = scalar_lea.vmem %s631_s6, 512  ;;  %p633_p10 = scmp.lt.s32.totalorder %s846_s10, %s631_s6 }
  0x26   : > { %p628_p3 = pnand %p626_p1, %p612_p2  ;;  %p634_p5 = scmp.lt.s32.totalorder %s632_s7, %s625_s30 }
  0x28   : > { %p629_p11 = pneg %p628_p3  ;;  %p635_p7 = por %p634_p5, %p633_p10 }
  0x2a   : > { %p636_p8 = pnand %p635_p7, %p629_p11 }
  0x2c   : > { %639 = shalt.err (!%p636_p8)
}
  0x2d   : > { %561 = dma.hbm_to_vmem [thread:$0]  (!%p842_p12), %s838_s8, 256, %s846_s10, %s168_s12  }
  0x2e   : > { %p1003_p13 = scmp.lt.s32.totalorder %s740_s18, 9  ;;  %p1004_p0 = scmp.ge.s32.totalorder %s740_s18, 1 }
  0x2f   : > { %s537_s13 = sshll.u32 %s831_s29, 5  ;;  %s550_s14 = sshll.u32 %s740_s18, 9 }
  0x30   : > { %p880_p4 = pnand %p1004_p0, %p1003_p13  ;;  %s889_s23 = scalar_lea.hbm %s994_s3, %s550_s14 }
  0x31   : > { %s190_s25 = scalar_lea.vmem [#allocation5], %s537_s13  ;;  %s187_s8 = scalar_lea.sflag [#allocation6], %s831_s29 }
  0x32   : > { %s1005_s9 = scalar_select %p880_p4, 1, 0 }
  0x33   : > { %s198_s30 = sshll.u32 %s190_s25, 4  ;;  %s640_s10 = scalar_lea.hbm %s889_s23, 512  ;;  %s199_s30 = int_to_ptr.vmem [resolvable:$true] %s198_s30 }
  0x34   : > { %p641_p10 = scmp.ne.s32.totalorder %s889_s23, %s640_s10  ;;  %s645_s6 = scalar_lea.hbm %s994_s3, 4096 }
  0x35   : > { %p646_p1 = scmp.lt.u32.totalorder %s889_s23, %s994_s3  ;;  %p647_p3 = scmp.lt.u32.totalorder %s645_s6, %s640_s10 }
  0x36   : > { %p643_p11 = pnand %p641_p10, %p612_p2  ;;  %p649_p7 = scmp.lt.u32.totalorder %s640_s10, %s889_s23 }
  0x37   : > { %p648_p5 = por %p647_p3, %p646_p1 }
  0x38   : > { %p644_p9 = pneg %p643_p11 }
  0x39   : > { %p650_p8 = por %p649_p7, %p648_p5 }
  0x3b   : > { %p651_p13 = pnand %p650_p8, %p644_p9 }
  0x3d   : > { %654 = shalt.err (!%p651_p13)
}
  0x3e   : > { %s655_s29 = scalar_lea.vmem %s199_s30, 512  ;;  %s743_s13 = smov [#allocation5]  }
  0x3f   : > { %p656_p0 = scmp.ne.s32.totalorder %s199_s30, %s655_s29  ;;  %s660_s20 = sshll.u32 %s743_s13, 4  ;;  %s661_s20 = int_to_ptr.vmem [resolvable:$false] %s660_s20 }
  0x40   : > { %s662_s22 = scalar_lea.vmem %s661_s20, 1024  ;;  %p663_p6 = scmp.lt.s32.totalorder %s199_s30, %s661_s20 }
  0x41   : > { %p658_p10 = pnand %p656_p0, %p612_p2  ;;  %p664_p4 = scmp.lt.s32.totalorder %s662_s22, %s655_s29 }
  0x43   : > { %p659_p11 = pneg %p658_p10  ;;  %p665_p1 = por %p664_p4, %p663_p6 }
  0x45   : > { %p666_p3 = pnand %p665_p1, %p659_p11 }
  0x47   : > { %669 = shalt.err (!%p666_p3)
}
  0x48   : > { %564 = dma.hbm_to_vmem [thread:$0]  (!%p842_p12), %s889_s23, 512, %s199_s30, %s187_s8  }
  0x49   : > { %p1006_p9 = scmp.ne.s32.totalorder %s1005_s9, 0 }
  0x4a   : > { %s914_s25 = sand.u32 (!%p1006_p9), 1, %s732_s16   ;;  %p1007_p2 = scmp.ne.s32.totalorder (!%p1006_p9), %s999_s26, 0 }
  0x4b   : > { %207 = sbr.rel (%p1006_p9) target bundleno = 243 (0xf3), region = 36  ;;  %s541_s10 = sshll.u32 (!%p1006_p9), %s914_s25, 4 }
  0x4c   : > { %s210_s12 = scalar_lea.sflag (!%p1006_p9), [#allocation3], %s914_s25  ;;  %s213_s5 = scalar_lea.vmem (!%p1006_p9), [#allocation2], %s541_s10 }
  0x52   : > { %715 = dma.done.wait (%p1007_p2), %s210_s12, 256  }
  0x53   : > { %717 = vsyncadd (%p1007_p2), %s210_s12, 4294967040  ;;  %s542_s11 = sshll.u32 %s914_s25, 5  ;;  %s219_s9 = scalar_lea.sflag [#allocation6], %s914_s25 }
  0x54   : > { %s926_s23 = scalar_lea.vmem [#allocation5], %s542_s11 }
  0x55   : > { %719 = dma.done.wait (%p1007_p2), %s219_s9, 512  }
  0x56   : > { %721 = vsyncadd (%p1007_p2), %s219_s9, 4294966784  ;;  %v744_v0 = vmov 0   ;;  %v745_v1 = vmov 1   ;;  %v258_v2 = vld [vmem:[%s992_s1] sm:$0xff]  ;;  %v746_v4 = vmov 2   ;;  %v279_v5 = vlaneseq  ;;  %v259_v27 = vld [vmem:[%s926_s23] sm:$0xff] }
  0x57   : > { %606 = vset.pattern.permute.xlu0 %v744_v0  ;;  %607 = vset.pattern.permute.xlu1 %v745_v1  ;;  %v255_v3 = vld [vmem:[%s991_s0] sm:$0xff]  ;;  %v256_v9 = vld [vmem:[%s213_s5] sm:$0x77]  ;;  %v260_v28 = vld [vmem:[%s926_s23 + $0x8] sm:$0xff]  ;;  %s551_s26 = sshll.u32 %s794_s19, 9  ;;  %s251_s14 = scalar_lea.vmem [#allocation7], %s542_s11 }
  0x58   : > { %265 = vperm.xlu0 %606, %v258_v2   ;;  %324 = vperm.xlu1 %607, %v255_v3   ;;  %v280_v6 = vshrl.u32 %v279_v5, 7  ;;  %v257_v10 = vld [vmem:[%s213_s5 + $0x8] sm:$0x77]  ;;  %v261_v29 = vld [vmem:[%s926_s23 + $0x10] sm:$0xff]  ;;  %s438_s29 = sshll.u32 %s251_s14, 4  ;;  %s948_s22 = scalar_lea.hbm %s995_s4, %s551_s26  ;;  %s950_s29 = int_to_ptr.vmem [resolvable:$true] %s438_s29 }
  0x59   : > { %v262_v30 = vld [vmem:[%s926_s23 + $0x18] sm:$0xff]  ;;  %s424_s19 = scalar_lea.sflag [#allocation4], %s914_s25  ;;  %s670_s10 = scalar_lea.vmem %s950_s29, 512 }
  0x5a   : > { %v329_v7 = vsub.s32 1, %v280_v6  ;;  %v333_v8 = vsub.s32 5, %v280_v6  ;;  %v281_v11 = vsub.s32 0, %v280_v6  ;;  %v285_v12 = vsub.s32 4, %v280_v6  ;;  %p671_p6 = scmp.ne.s32.totalorder %s950_s29, %s670_s10  ;;  %p1008_p12 = scmp.ne.s32.totalorder %s1000_s27, 0 }
  0x5b   : > { %v377_v13 = vsub.s32 2, %v280_v6  ;;  %v381_v14 = vsub.s32 6, %v280_v6  ;;  %s747_s12 = smov [#allocation7]  }
  0x5c   : > { %274 = vperm.xlu0 %606, %v255_v3   ;;  %608 = vset.pattern.permute.xlu1 %v746_v4  ;;  %v330_v15 = vrot.slane %v256_v9, %v329_v7  ;;  %v334_v16 = vrot.slane %v256_v9, %v333_v8  ;;  %v338_v17 = vrot.slane %v257_v10, %v329_v7  ;;  %p672_p4 = pnand %p671_p6, %p1008_p12  ;;  %s674_s5 = sshll.u32 %s747_s12, 4  ;;  %s675_s5 = int_to_ptr.vmem [resolvable:$false] %s674_s5 }
  0x5d   : > { %372 = vperm.xlu1 %608, %v255_v3   ;;  %v342_v18 = vrot.slane %v257_v10, %v333_v8  ;;  %v282_v19 = vrot.slane %v256_v9, %v281_v11  ;;  %v286_v20 = vrot.slane %v256_v9, %v285_v12  ;;  %v290_v21 = vrot.slane %v257_v10, %v281_v11  ;;  %s676_s11 = scalar_lea.vmem %s675_s5, 1024  ;;  %p677_p7 = scmp.lt.s32.totalorder %s950_s29, %s675_s5 }
  0x5e   : > { %v294_v22 = vrot.slane %v257_v10, %v285_v12  ;;  %v378_v23 = vrot.slane %v256_v9, %v377_v13  ;;  %v382_v24 = vrot.slane %v256_v9, %v381_v14  ;;  %v386_v25 = vrot.slane %v257_v10, %v377_v13  ;;  %p673_p5 = pneg %p672_p4  ;;  %p678_p8 = scmp.lt.s32.totalorder %s676_s11, %s670_s10 }
  0x5f   : > { %v390_v26 = vrot.slane %v257_v10, %v381_v14  ;;  %v350_v32 = vrot.slane %v330_v15, %v329_v7  ;;  %v354_v33 = vrot.slane %v334_v16, %v329_v7  ;;  %v358_v34 = vrot.slane %v338_v17, %v329_v7 }
  0x60   : > { %609 = vset.pattern.permute.xlu0 %v746_v4  ;;  %v362_v35 = vrot.slane %v342_v18, %v329_v7  ;;  %v302_v37 = vrot.slane %v282_v19, %v281_v11  ;;  %v306_v38 = vrot.slane %v286_v20, %v281_v11  ;;  %v310_v39 = vrot.slane %v290_v21, %v281_v11  ;;  %p679_p13 = por %p678_p8, %p677_p7 }
  0x61   : > { %v314_v40 = vrot.slane %v294_v22, %v281_v11  ;;  %v398_v41 = vrot.slane %v378_v23, %v377_v13  ;;  %v402_v42 = vrot.slane %v382_v24, %v377_v13  ;;  %v406_v43 = vrot.slane %v386_v25, %v377_v13 }
  0x62   : > { %v410_v44 = vrot.slane %v390_v26, %v377_v13  ;;  %p680_p0 = pnand %p679_p13, %p673_p5 }
  0xd7   : > { %v266_v31 = vpop.permute.xlu0 %265  ;;  %v325_v36 = vpop.permute.xlu1 %324 }
  0xd8   : > { %v268_v45 = vadd.f32 %v266_v31, %v259_v27  ;;  %v269_v46 = vadd.f32 %v266_v31, %v260_v28  ;;  %v270_v47 = vadd.f32 %v266_v31, %v261_v29  ;;  %v271_v48 = vadd.f32 %v266_v31, %v262_v30 }
  0xd9   : > { %v363_v49 = vmul.f32 %v350_v32, %v325_v36  ;;  %v364_v50 = vmul.f32 %v354_v33, %v325_v36  ;;  %v365_v51 = vmul.f32 %v358_v34, %v325_v36  ;;  %v366_v52 = vmul.f32 %v362_v35, %v325_v36 }
  0xdb   : > { %v275_v53 = vpop.permute.xlu0 %274 }
  0xdc   : > { %v315_v54 = vmul.f32 %v302_v37, %v275_v53  ;;  %v316_v55 = vmul.f32 %v306_v38, %v275_v53  ;;  %v317_v56 = vmul.f32 %v310_v39, %v275_v53  ;;  %v318_v57 = vmul.f32 %v314_v40, %v275_v53  ;;  %v373_v58 = vpop.permute.xlu1 %372 }
  0xdd   : > { %v411_v59 = vmul.f32 %v398_v41, %v373_v58  ;;  %v412_v60 = vmul.f32 %v402_v42, %v373_v58  ;;  %v413_v61 = vmul.f32 %v406_v43, %v373_v58  ;;  %v414_v62 = vmul.f32 %v410_v44, %v373_v58 }
  0xde   : > { %v319_v63 = vadd.f32 %v315_v54, %v268_v45  ;;  %v320_v0 = vadd.f32 %v316_v55, %v269_v46  ;;  %v321_v1 = vadd.f32 %v317_v56, %v270_v47  ;;  %v322_v2 = vadd.f32 %v318_v57, %v271_v48 }
  0xe0   : > { %v367_v3 = vadd.f32 %v363_v49, %v319_v63  ;;  %v368_v4 = vadd.f32 %v364_v50, %v320_v0  ;;  %v369_v5 = vadd.f32 %v365_v51, %v321_v1  ;;  %v370_v6 = vadd.f32 %v366_v52, %v322_v2 }
  0xe2   : > { %v415_v7 = vadd.f32 %v411_v59, %v367_v3  ;;  %v416_v8 = vadd.f32 %v412_v60, %v368_v4  ;;  %v417_v9 = vadd.f32 %v413_v61, %v369_v5  ;;  %v418_v10 = vadd.f32 %v414_v62, %v370_v6 }
  0xe4   : > { %419 = vst [vmem:[%s251_s14] sm:$0xff] %v415_v7  ;;  %420 = vst [vmem:[%s251_s14 + $0x8] sm:$0xff] %v416_v8 }
  0xe5   : > { %421 = vst [vmem:[%s251_s14 + $0x10] sm:$0xff] %v417_v9  ;;  %422 = vst [vmem:[%s251_s14 + $0x18] sm:$0xff] %v418_v10 }
  0xe6   : > { %683 = shalt.err (!%p680_p0)
}
  0xe7   : > { %s684_s25 = scalar_lea.hbm %s948_s22, 512  ;;  %s688_s30 = scalar_lea.hbm %s995_s4, 4096 }
  0xe8   : > { %p685_p10 = scmp.ne.s32.totalorder %s948_s22, %s684_s25  ;;  %p689_p3 = scmp.lt.u32.totalorder %s948_s22, %s995_s4 }
  0xe9   : > { %p690_p9 = scmp.lt.u32.totalorder %s688_s30, %s684_s25  ;;  %p692_p6 = scmp.lt.u32.totalorder %s684_s25, %s948_s22 }
  0xea   : > { %p686_p11 = pnand %p685_p10, %p1008_p12 }
  0xeb   : > { %p691_p2 = por %p690_p9, %p689_p3 }
  0xec   : > { %p687_p1 = pneg %p686_p11 }
  0xed   : > { %p693_p4 = por %p692_p6, %p691_p2 }
  0xef   : > { %p694_p5 = pnand %p693_p4, %p687_p1 }
  0xf1   : > { %697 = shalt.err (!%p694_p5)
}
  0xf2   : > { %556 = dma.vmem_to_hbm [thread:$0]  (%p1008_p12), %s950_s29, 512, %s948_s22, %s424_s19  }
  0xf3 PF: > { %p570_p7 = scmp.ge.s32.totalorder %s740_s18, 2  ;;  %s450_s7 = sand.u32 1, %s728_s15  }
  0xf4   : > { %p1009_p8 = scmp.ne.s32.totalorder %s1001_s28, 0  ;;  %s451_s26 = scalar_lea.sflag [#allocation4], %s450_s7 }
  0xf6   : > { %p566_p13 = pnand %p570_p7, %p1009_p8 }
  0xf8   : > { %723 = dma.done.wait (!%p566_p13), %s451_s26, 512  }
  0xf9   : > { %725 = vsyncadd (!%p566_p13), %s451_s26, 4294966784  ;;  %p20_p0 = scmp.ge.s32.totalorder %s798_s21, 10   ;;  %s1010_s15 = smov %s732_s16 }
  0xfa   : > { %s1011_s16 = smov %s736_s17  ;;  %s1012_s17 = smov %s810_s24 }
  0xfb   : > { %s1013_s18 = smov %s798_s21  ;;  %22 = sbr.rel (!%p20_p0) target bundleno = 7 (0x7), region = 94 }
 0x102   :  { %456 = vsyncpa [#allocation3], 1 }
 0x103   :  { %458 = vsyncpa [#allocation3 + $0x1], 1 }
 0x104   :  { %459 = vsyncpa [#allocation6], 1 }
 0x105   :  { %461 = vsyncpa [#allocation6 + $0x1], 1 }
 0x106   :  { %462 = vsyncpa [#allocation4], 1 }
 0x107   :  { %464 = vsyncpa [#allocation4 + $0x1], 1 }

</bundles_post_ra>
